<compile_context>
chip_gen: v7x
topology: tpu7x:2x2x1
jax: 0.10.0
libtpu: 0.0.40
codegen_flags: <defaults>
</compile_context>

<pallas_src>
import math

import jax
import jax.numpy as jnp
import numpy as np
from jax.experimental import pallas as pl
from jax.experimental.pallas import tpu as pltpu


def _round_up(v: int, m: int) -> int:
    return (v + m - 1) // m * m


# ----------------------------------------------------------------------------
# Pallas kernel
# ----------------------------------------------------------------------------
def _make_kan_kernel(chebyshev_degree: int, in_features: int):
    degree = chebyshev_degree

    def kan_kernel(x_ref, w_ref, b_ref, o_ref, acts_ref):
        # Elementwise path in f32 on the VPU.
        x = x_ref[...].astype(jnp.float32)

        # Single EUP exp shared by SiLU and tanh, computed on |x| so u in (0,1]
        # (no inf anywhere; approx reciprocals operate on denominators in [1,2]).
        ax = jnp.abs(x)
        u = jnp.exp(-ax)
        pos = x >= 0.0

        #   sigmoid(x) = 1/(1+u)   for x >= 0,   u/(1+u) for x < 0
        sig = jnp.where(pos, 1.0, u) * pl.reciprocal(1.0 + u, approx=True)
        silu = x * sig
        acts_ref[:, 0:in_features] = silu.astype(acts_ref.dtype)

        if degree >= 1:
            #   tanh(x) = sign(x) * (1-u^2)/(1+u^2)
            u2 = u * u
            t = (jnp.where(pos, 1.0, -1.0) * (1.0 - u2)
                 * pl.reciprocal(1.0 + u2, approx=True))
            acts_ref[:, in_features:2 * in_features] = t.astype(acts_ref.dtype)

            # Chebyshev recurrence T_k = 2 t T_{k-1} - T_{k-2}; T_0 folded into bias.
            t_km2 = jnp.ones_like(t)   # T_0
            t_km1 = t                  # T_1
            for k in range(2, degree + 1):
                t_k = 2.0 * t * t_km1 - t_km2
                acts_ref[:, k * in_features:(k + 1) * in_features] = (
                    t_k.astype(acts_ref.dtype))
                t_km2, t_km1 = t_km1, t_k

        # One deep, densely packed bf16 MXU matmul with f32 accumulation.
        acc = jnp.dot(acts_ref[...], w_ref[...],
                      preferred_element_type=jnp.float32)
        o_ref[...] = (acc + b_ref[...]).astype(o_ref.dtype)

    return kan_kernel


# ----------------------------------------------------------------------------
# One-time weight re-layout (hoisted out of the forward path)
# ----------------------------------------------------------------------------
def prepare_kan_params(base_weight, chebyshev_weight, chebyshev_scaler,
                       chebyshev_degree: int, *, dot_dtype=jnp.bfloat16):
    """Build (w_fused, bias) once; reuse across forward calls.

    base_weight:      (out, in)
    chebyshev_weight: (out, in, degree+1)
    chebyshev_scaler: (out, in)
    returns: w_fused (n_terms*in, out_pad) in dot_dtype, bias (1, out_pad) f32
    """
    out_features, in_features = base_weight.shape
    degree = chebyshev_degree
    out_pad = _round_up(out_features, 128)

    scaled = (chebyshev_weight.astype(jnp.float32)
              * chebyshev_scaler.astype(jnp.float32)[:, :, None])   # (out,in,K+1)

    def pad_out(w_io):  # (in, out) -> (in, out_pad): zero columns are harmless
        return jnp.pad(w_io, ((0, 0), (0, out_pad - out_features)))

    slabs = [pad_out(base_weight.astype(jnp.float32).T)]            # SiLU slot
    for k in range(1, degree + 1):
        slabs.append(pad_out(scaled[:, :, k].T))                    # T_k slot
    w_fused = jnp.concatenate(slabs, axis=0).astype(dot_dtype)      # (nT*in, out_pad)

    bias = scaled[:, :, 0].sum(axis=1)                              # T_0 == ones
    bias = jnp.pad(bias, (0, out_pad - out_features)).reshape(1, out_pad)
    return w_fused, bias.astype(jnp.float32)


# ----------------------------------------------------------------------------
# Forward wrapper (pallas_call)
# ----------------------------------------------------------------------------
def chebyshev_kan_forward(x, w_fused, bias, *, in_features: int,
                          out_features: int, chebyshev_degree: int,
                          batch_tile: int = 512):
    degree = chebyshev_degree
    n_terms = 1 + degree                     # SiLU + T_1..T_degree (T_0 -> bias)
    slab_w = n_terms * in_features
    out_pad = bias.shape[-1]
    assert w_fused.shape == (slab_w, out_pad), w_fused.shape

    orig_shape = x.shape
    xb = x.reshape(-1, in_features)
    B = xb.shape[0]

    # Batch tile: multiple of 8 sublanes; prefer >= 2 grid steps so the
    # "parallel" axis can feed both TensorCores on v7x.
    TB = min(batch_tile, _round_up(max(B, 1), 8))
    if B > 8 and _round_up(B, TB) // TB < 2:
        TB = max(8, _round_up(_round_up(B, 8) // 2, 8))
    B_pad = _round_up(B, TB)

    # Pad only the batch dim; keep x's original dtype (cast happens in-kernel).
    xp = jnp.pad(xb, ((0, B_pad - B), (0, 0)))

    # Explicit VMEM budget (double buffers for x/out, resident weights+bias,
    # bf16 activation-slab scratch), conservative across v5e/v6e/v7x.
    vmem_bytes = (2 * TB * in_features * xp.dtype.itemsize
                  + 2 * TB * out_pad * x.dtype.itemsize
                  + 2 * w_fused.size * w_fused.dtype.itemsize
                  + 2 * bias.size * 4
                  + TB * slab_w * 2
                  + TB * out_pad * 4)
    vmem_limit = int(min(64 * 1024 * 1024, max(8 * 1024 * 1024, 2 * vmem_bytes)))

    out = pl.pallas_call(
        _make_kan_kernel(degree, in_features),
        out_shape=jax.ShapeDtypeStruct((B_pad, out_pad), x.dtype),
        grid=(B_pad // TB,),
        in_specs=[
            # x tile: last dim == full array dim (exempt from the 128 rule).
            pl.BlockSpec((TB, in_features), lambda i: (i, 0)),
            # Grid-invariant operands (fetched once; constant index_map).
            # TODO(synk): pipeline_mode=pl.Buffered(1) would also drop the dead
            # second buffer for these resident operands.
            pl.BlockSpec((slab_w, out_pad), lambda i: (0, 0)),
            pl.BlockSpec((1, out_pad), lambda i: (0, 0)),
        ],
        out_specs=pl.BlockSpec((TB, out_pad), lambda i: (i, 0)),
        scratch_shapes=[pltpu.VMEM((TB, slab_w), jnp.bfloat16)],
        compiler_params=pltpu.CompilerParams(
            dimension_semantics=("parallel",),
            vmem_limit_bytes=vmem_limit),
    )(xp, w_fused, bias)

    out = out[:B, :out_features]
    return out.reshape(*orig_shape[:-1], out_features)


# ----------------------------------------------------------------------------
# Reference (pure JAX, f32) for correctness check
# ----------------------------------------------------------------------------
def chebyshev_kan_reference(x, base_weight, chebyshev_weight, chebyshev_scaler,
                            chebyshev_degree: int):
    orig_shape = x.shape
    in_features = orig_shape[-1]
    out_features = base_weight.shape[0]
    xb = x.reshape(-1, in_features).astype(jnp.float32)

    silu = xb * jax.nn.sigmoid(xb)
    base_out = silu @ base_weight.astype(jnp.float32).T

    t = jnp.tanh(xb)
    T = [jnp.ones_like(t), t]
    for _ in range(2, chebyshev_degree + 1):
        T.append(2.0 * t * T[-1] - T[-2])
    bases = jnp.stack(T[:chebyshev_degree + 1], axis=-1)              # (B, in, K+1)
    scaled = (chebyshev_weight.astype(jnp.float32)
              * chebyshev_scaler.astype(jnp.float32)[:, :, None])     # (out, in, K+1)
    cheb_out = jnp.einsum('bik,jik->bj', bases, scaled)

    out = base_out + cheb_out
    return out.reshape(*orig_shape[:-1], out_features).astype(x.dtype)


# ----------------------------------------------------------------------------
# Main
# ----------------------------------------------------------------------------
if __name__ == "__main__":
    in_features = 32
    out_features = 16
    chebyshev_degree = 3
    scale_noise = 0.1
    scale_base = 1.0
    scale_chebyshev = 1.0

    key = jax.random.PRNGKey(0)
    k_x, k_bw, k_noise, k_scaler = jax.random.split(key, 4)

    # Input: leading dims (2, 8), feature dim = in_features  -> x: (2, 8, 32)
    x = jax.random.normal(k_x, (2, 8, in_features), dtype=jnp.float32)

    # Deterministic parameter init mirroring reset_parameters() shapes/scales.
    def kaiming_uniform(k, shape, a):
        fan_in = shape[1]
        gain = math.sqrt(2.0 / (1.0 + a * a))
        bound = math.sqrt(3.0) * gain / math.sqrt(fan_in)
        return jax.random.uniform(k, shape, jnp.float32, -bound, bound)

    base_weight = kaiming_uniform(
        k_bw, (out_features, in_features), a=math.sqrt(5) * scale_base)
    chebyshev_weight = (
        jax.random.uniform(
            k_noise, (out_features, in_features, chebyshev_degree + 1),
            jnp.float32) - 0.5) * scale_noise
    chebyshev_scaler = kaiming_uniform(
        k_scaler, (out_features, in_features), a=math.sqrt(5) * scale_chebyshev)

    # One-time weight re-layout (hoisted out of the forward path).
    w_fused, bias = prepare_kan_params(
        base_weight, chebyshev_weight, chebyshev_scaler, chebyshev_degree)
    w_fused = jax.block_until_ready(w_fused)

    out = chebyshev_kan_forward(
        x, w_fused, bias,
        in_features=in_features, out_features=out_features,
        chebyshev_degree=chebyshev_degree)
    out = jax.block_until_ready(out)

    ref = chebyshev_kan_reference(
        x, base_weight, chebyshev_weight, chebyshev_scaler, chebyshev_degree)
    ref = jax.block_until_ready(ref)

    assert out.shape == (2, 8, out_features), out.shape
    # Tolerance relaxed vs f32 because the MXU operands are bf16 (f32 accumulate)
    # and the activations use approx EUP reciprocals.
    np.testing.assert_allclose(np.asarray(out), np.asarray(ref),
                               rtol=2e-2, atol=2e-2)
    print("KERNEL_OK")
</pallas_src>

<mosaic_0001>
module attributes {stable_mosaic.version = 11 : i64} {
  func.func @kan_kernel(%arg0: i32, %arg1: memref<8x32xf32, #tpu.memory_space<vmem>>, %arg2: memref<128x128xbf16, #tpu.memory_space<vmem>>, %arg3: memref<1x128xf32, #tpu.memory_space<vmem>>, %arg4: memref<8x128xf32, #tpu.memory_space<vmem>>, %arg5: memref<8x128xbf16, #tpu.memory_space<vmem>>) attributes {dimension_semantics = [#tpu.dimension_semantics<parallel>], iteration_bounds = array<i64: 2>, scalar_prefetch = 0 : i64, scratch_operands = 1 : i64, tpu.core_type = #tpu.core_type<tc>, window_params = [{transform_indices = @transform_0, window_bounds = array<i64: 8, 32>}, {pipeline_mode = #tpu.pipeline_mode<synchronous>, transform_indices = @transform_1, window_bounds = array<i64: 128, 128>}, {pipeline_mode = #tpu.pipeline_mode<synchronous>, transform_indices = @transform_2, window_bounds = array<i64: 1, 128>}, {transform_indices = @transform_3, window_bounds = array<i64: 8, 128>}]} {
    %c0 = arith.constant 0 : index
    %c0_0 = arith.constant 0 : index
    %0 = vector.load %arg1[%c0, %c0_0] : memref<8x32xf32, #tpu.memory_space<vmem>>, vector<8x32xf32>
    %1 = math.absf %0 : vector<8x32xf32>
    %cst = arith.constant 0.000000e+00 : f32
    %2 = vector.broadcast %cst : f32 to vector<8x32xf32>
    %3 = arith.subf %2, %1 : vector<8x32xf32>
    %4 = math.exp %3 : vector<8x32xf32>
    %cst_1 = arith.constant 0.000000e+00 : f32
    %5 = vector.broadcast %cst_1 : f32 to vector<8x32xf32>
    %6 = arith.cmpf oge, %0, %5 : vector<8x32xf32>
    %cst_2 = arith.constant 1.000000e+00 : f32
    %7 = vector.broadcast %cst_2 : f32 to vector<8x32xf32>
    %8 = arith.select %6, %7, %4 : vector<8x32xi1>, vector<8x32xf32>
    %cst_3 = arith.constant 1.000000e+00 : f32
    %9 = vector.broadcast %cst_3 : f32 to vector<8x32xf32>
    %10 = arith.addf %9, %4 : vector<8x32xf32>
    %11 = tpu.reciprocal %10 {approx = true} : vector<8x32xf32> -> vector<8x32xf32>
    %12 = arith.mulf %8, %11 : vector<8x32xf32>
    %13 = arith.mulf %0, %12 : vector<8x32xf32>
    %14 = arith.truncf %13 : vector<8x32xf32> to vector<8x32xbf16>
    %c0_4 = arith.constant 0 : index
    %c0_5 = arith.constant 0 : index
    %15 = vector.load %arg5[%c0_4, %c0_5] : memref<8x128xbf16, #tpu.memory_space<vmem>>, vector<8x32xbf16>
    tpu.vector_store %arg5[%c0_4, %c0_5], %14 {strides = array<i32>} : memref<8x128xbf16, #tpu.memory_space<vmem>>, vector<8x32xbf16>,
    %16 = arith.mulf %4, %4 : vector<8x32xf32>
    %cst_6 = arith.constant 1.000000e+00 : f32
    %cst_7 = arith.constant -1.000000e+00 : f32
    %17 = vector.broadcast %cst_6 : f32 to vector<8x32xf32>
    %18 = vector.broadcast %cst_7 : f32 to vector<8x32xf32>
    %19 = arith.select %6, %17, %18 : vector<8x32xi1>, vector<8x32xf32>
    %cst_8 = arith.constant 1.000000e+00 : f32
    %20 = vector.broadcast %cst_8 : f32 to vector<8x32xf32>
    %21 = arith.subf %20, %16 : vector<8x32xf32>
    %22 = arith.mulf %19, %21 : vector<8x32xf32>
    %cst_9 = arith.constant 1.000000e+00 : f32
    %23 = vector.broadcast %cst_9 : f32 to vector<8x32xf32>
    %24 = arith.addf %23, %16 : vector<8x32xf32>
    %25 = tpu.reciprocal %24 {approx = true} : vector<8x32xf32> -> vector<8x32xf32>
    %26 = arith.mulf %22, %25 : vector<8x32xf32>
    %27 = arith.truncf %26 : vector<8x32xf32> to vector<8x32xbf16>
    %c0_10 = arith.constant 0 : index
    %c32 = arith.constant 32 : index
    %28 = vector.load %arg5[%c0_10, %c32] : memref<8x128xbf16, #tpu.memory_space<vmem>>, vector<8x32xbf16>
    tpu.vector_store %arg5[%c0_10, %c32], %27 {strides = array<i32>} : memref<8x128xbf16, #tpu.memory_space<vmem>>, vector<8x32xbf16>,
    %cst_11 = arith.constant 1.000000e+00 : f32
    %29 = vector.broadcast %cst_11 : f32 to vector<8x32xf32>
    %cst_12 = arith.constant 2.000000e+00 : f32
    %30 = vector.broadcast %cst_12 : f32 to vector<8x32xf32>
    %31 = arith.mulf %30, %26 : vector<8x32xf32>
    %32 = arith.mulf %31, %26 : vector<8x32xf32>
    %33 = arith.subf %32, %29 : vector<8x32xf32>
    %34 = arith.truncf %33 : vector<8x32xf32> to vector<8x32xbf16>
    %c0_13 = arith.constant 0 : index
    %c64 = arith.constant 64 : index
    %35 = vector.load %arg5[%c0_13, %c64] : memref<8x128xbf16, #tpu.memory_space<vmem>>, vector<8x32xbf16>
    tpu.vector_store %arg5[%c0_13, %c64], %34 {strides = array<i32>} : memref<8x128xbf16, #tpu.memory_space<vmem>>, vector<8x32xbf16>,
    %cst_14 = arith.constant 2.000000e+00 : f32
    %36 = vector.broadcast %cst_14 : f32 to vector<8x32xf32>
    %37 = arith.mulf %36, %26 : vector<8x32xf32>
    %38 = arith.mulf %37, %33 : vector<8x32xf32>
    %39 = arith.subf %38, %26 : vector<8x32xf32>
    %40 = arith.truncf %39 : vector<8x32xf32> to vector<8x32xbf16>
    %c0_15 = arith.constant 0 : index
    %c96 = arith.constant 96 : index
    %41 = vector.load %arg5[%c0_15, %c96] : memref<8x128xbf16, #tpu.memory_space<vmem>>, vector<8x32xbf16>
    tpu.vector_store %arg5[%c0_15, %c96], %40 {strides = array<i32>} : memref<8x128xbf16, #tpu.memory_space<vmem>>, vector<8x32xbf16>,
    %c0_16 = arith.constant 0 : index
    %c0_17 = arith.constant 0 : index
    %42 = vector.load %arg5[%c0_16, %c0_17] : memref<8x128xbf16, #tpu.memory_space<vmem>>, vector<8x128xbf16>
    %c0_18 = arith.constant 0 : index
    %c0_19 = arith.constant 0 : index
    %43 = vector.load %arg2[%c0_18, %c0_19] : memref<128x128xbf16, #tpu.memory_space<vmem>>, vector<128x128xbf16>
    %cst_20 = arith.constant dense<0.000000e+00> : vector<8x128xf32>
    %44 = tpu.matmul %42, %43, %cst_20 {dimension_numbers = #tpu.dot_dimension_numbers<[1], [0], [0], [1], [0, 0, 1, 1], [], []>} : vector<8x128xbf16>, vector<128x128xbf16>, vector<8x128xf32> -> vector<8x128xf32>
    %c0_21 = arith.constant 0 : index
    %c0_22 = arith.constant 0 : index
    %45 = vector.load %arg3[%c0_21, %c0_22] : memref<1x128xf32, #tpu.memory_space<vmem>>, vector<1x128xf32>
    %46 = vector.broadcast %45 : vector<1x128xf32> to vector<8x128xf32>
    %47 = arith.addf %44, %46 : vector<8x128xf32>
    %c0_23 = arith.constant 0 : index
    %c0_24 = arith.constant 0 : index
    %48 = vector.load %arg4[%c0_23, %c0_24] : memref<8x128xf32, #tpu.memory_space<vmem>>, vector<8x128xf32>
    tpu.vector_store %arg4[%c0_23, %c0_24], %47 {strides = array<i32>} : memref<8x128xf32, #tpu.memory_space<vmem>>, vector<8x128xf32>,
    return
  }
  func.func @transform_0(%arg0: i32) -> (i32, i32) {
    %c0_i32 = arith.constant 0 : i32
    %c0_i32_0 = arith.constant 0 : i32
    return %arg0, %c0_i32 : i32, i32
  }
  func.func @transform_1(%arg0: i32) -> (i32, i32) {
    %c0_i32 = arith.constant 0 : i32
    %c0_i32_0 = arith.constant 0 : i32
    %c0_i32_1 = arith.constant 0 : i32
    return %c0_i32, %c0_i32_0 : i32, i32
  }
  func.func @transform_2(%arg0: i32) -> (i32, i32) {
    %c0_i32 = arith.constant 0 : i32
    %c0_i32_0 = arith.constant 0 : i32
    %c0_i32_1 = arith.constant 0 : i32
    return %c0_i32, %c0_i32_0 : i32, i32
  }
  func.func @transform_3(%arg0: i32) -> (i32, i32) {
    %c0_i32 = arith.constant 0 : i32
    %c0_i32_0 = arith.constant 0 : i32
    return %arg0, %c0_i32 : i32, i32
  }
}

</mosaic_0001>

<bundles_post_ra>
// kernel: tpu_custom_call.1
= control target key start
LH: loop header
LB: loop body
LE: loop exit
PB: predicated region body
PF: predicated region fallthrough
CT: control target
= control target key end

     0   :  { %8 = vsyncpa [#allocation4], 0  ;;  %s964_s0 = inlined_call_operand.hbm [shape: f32[16,32], index: 0, kind: input, shape index: {}]   ;;  %s965_s1 = inlined_call_operand.hbm [shape: bf16[128,128], index: 1, kind: input, shape index: {}]   ;;  %s966_s2 = inlined_call_operand.vmem [shape: f32[1,128], index: 2, kind: input, shape index: {}]   ;;  %s967_s3 = inlined_call_operand.hbm [shape: f32[16,128], index: 3, kind: output, shape index: {}]  }
   0x1   :  { %10 = vsyncpa [#allocation4 + $0x1], 0 }
   0x2   :  { %11 = vsyncpa [#allocation7], 0 }
   0x3   :  { %12 = vsyncpa [#allocation5], 0 }
   0x4   :  { %14 = vsyncpa [#allocation5 + $0x1], 0  ;;  %s761_s12 = smov 0   ;;  %s763_s13 = smov 0  }
   0x5   :  { %s765_s14 = smov 0   ;;  %s767_s15 = smov 0  }
   0x6 LB: > { %s782_s16 = sadd.s32 4294967295, %s728_s15   ;;  %s462_s17 = sadd.s32 4294967294, %s728_s15   ;;  %s728_s15 = sphi %s767_s15, %s987_s15   ;;  %s724_s14 = sphi %s765_s14, %s986_s14   ;;  %s720_s13 = sphi %s763_s13, %s985_s13   ;;  %s716_s12 = sphi %s761_s12, %s984_s12  }
   0x7   : > { %p40_p0 = scmp.ne.s32.totalorder %s720_s13, %s716_s12  ;;  %p968_p1 = scmp.eq.s32.totalorder %s782_s16, 0 }
   0x8   : > { %p112_p3 = scmp.eq.s32.totalorder %s462_s17, 1  ;;  %p463_p5 = scmp.ge.s32.totalorder %s728_s15, 1 }
   0x9   : > { %p791_p4 = por %p968_p1, %p40_p0  ;;  %p119_p7 = scmp.lt.s32.totalorder %s728_s15, 3 }
   0xa   : > { %p796_p6 = por %p112_p3, %p40_p0  ;;  %s730_s21 = smov [#allocation6]  }
   0xb   : > { %s971_s18 = scalar_select %p791_p4, 1, 0 }
   0xc   : > { %s972_s19 = scalar_select %p796_p6, 1, 0 }
   0xd   : > { %p801_p8 = pnand %p463_p5, %p119_p7  ;;  %s131_s22 = sshll.u32 %s730_s21, 4  ;;  %s805_s22 = int_to_ptr.vmem [resolvable:$true] %s131_s22 }
   0xe   : > { %s817_s24 = sadd.s32 1, %s728_s15   ;;  %s27_s25 = sadd.s32 1, %s724_s14 }
   0xf   : > { %s973_s20 = scalar_select %p801_p8, 1, 0 }
  0x10   : > { %p529_p9 = pneg %p801_p8  ;;  %s24_s26 = ssub.s32 %s728_s15, %s817_s24 }
  0x11   : > { %s600_s29 = scalar_lea.hbm %s965_s1, 1024 }
  0x12   : > { %p812_p11 = pnand %p529_p9, %p968_p1  ;;  %p601_p12 = scmp.ne.s32.totalorder %s965_s1, %s600_s29 }
  0x13   : > { %p607_p5 = scmp.lt.u32.totalorder %s600_s29, %s965_s1 }
  0x14   : > { %p602_p13 = pneg %p812_p11 }
  0x16   : > { %p603_p0 = pnand %p602_p13, %p601_p12 }
  0x18   : > { %p604_p3 = pneg %p603_p0 }
  0x1a   : > { %p609_p7 = pnand %p607_p5, %p604_p3 }
  0x1c   : > { %612 = shalt.err (!%p609_p7)
}
  0x1d   : > { %s613_s7 = scalar_lea.vmem %s805_s22, 1024  ;;  %p621_p2 = scmp.lt.s32.totalorder %s805_s22, %s805_s22 }
  0x1e   : > { %p614_p9 = scmp.ne.s32.totalorder %s805_s22, %s613_s7  ;;  %p622_p6 = scmp.lt.s32.totalorder %s613_s7, %s613_s7 }
  0x20   : > { %p616_p10 = pnand %p614_p9, %p602_p13  ;;  %p623_p4 = por %p622_p6, %p621_p2 }
  0x22   : > { %p617_p1 = pneg %p616_p10 }
  0x24   : > { %p624_p8 = pnand %p623_p4, %p617_p1 }
  0x26   : > { %627 = shalt.err (!%p624_p8)
}
  0x27   : > { %s731_s8 = smov 64   ;;  %s732_s9 = smov 4  }
  0x28   : > { %532 = dma.hbm_to_vmem [thread:$0]  (!%p812_p11), %s965_s1, 1024, %s805_s22, [#allocation7], %s731_s8, %s731_s8, %s732_s9  }
  0x29   : > { %p25_p2 = scmp.eq.s32.totalorder %s24_s26, 0  ;;  %p34_p1 = scmp.ne.s32.totalorder %s724_s14, %s720_s13 }
  0x2a   : > { %p35_p4 = scmp.eq.s32.totalorder %s728_s15, 0  ;;  %p542_p6 = scmp.lt.s32.totalorder %s728_s15, 2 }
  0x2b   : > { %s848_s17 = scalar_select %p25_p2, %s724_s14, %s27_s25  }
  0x2c   : > { %p36_p8 = por %p35_p4, %p34_p1  ;;  %p975_p10 = scmp.eq.s32.totalorder %s782_s16, 1 }
  0x2d   : > { %s148_s27 = sand.u32 1, %s724_s14   ;;  %s467_s28 = sshll.u32 %s728_s15, 7 }
  0x2e   : > { %p852_p12 = por %p975_p10, %p34_p1  ;;  %s466_s29 = sshll.u32 %s148_s27, 3 }
  0x2f   : > { %s861_s4 = scalar_lea.hbm %s964_s0, %s467_s28  ;;  %s152_s22 = scalar_lea.vmem [#allocation3], %s466_s29 }
  0x30   : > { %s159_s25 = sshll.u32 %s152_s22, 4  ;;  %p863_p11 = pnand %p542_p6, %p36_p8  ;;  %s867_s25 = int_to_ptr.vmem [resolvable:$true] %s159_s25 }
  0x31   : > { %s149_s5 = scalar_lea.sflag [#allocation4], %s148_s27  ;;  %s628_s6 = scalar_lea.hbm %s861_s4, 128 }
  0x32   : > { %p629_p13 = scmp.ne.s32.totalorder %s861_s4, %s628_s6  ;;  %p630_p0 = pneg %p863_p11 }
  0x33   : > { %s633_s9 = scalar_lea.hbm %s964_s0, 256  ;;  %p634_p7 = scmp.lt.u32.totalorder %s861_s4, %s964_s0 }
  0x34   : > { %p631_p3 = pnand %p630_p0, %p629_p13  ;;  %p635_p9 = scmp.lt.u32.totalorder %s633_s9, %s628_s6 }
  0x35   : > { %p637_p1 = scmp.lt.u32.totalorder %s628_s6, %s861_s4 }
  0x36   : > { %p632_p5 = pneg %p631_p3  ;;  %p636_p2 = por %p635_p9, %p634_p7 }
  0x38   : > { %p638_p4 = por %p637_p1, %p636_p2 }
  0x3a   : > { %p639_p6 = pnand %p638_p4, %p632_p5 }
  0x3c   : > { %642 = shalt.err (!%p639_p6)
}
  0x3d   : > { %s643_s27 = scalar_lea.vmem %s867_s25, 128  ;;  %s733_s28 = smov [#allocation3]  }
  0x3e   : > { %p644_p8 = scmp.ne.s32.totalorder %s867_s25, %s643_s27  ;;  %s648_s29 = sshll.u32 %s733_s28, 4  ;;  %s649_s29 = int_to_ptr.vmem [resolvable:$false] %s648_s29 }
  0x3f   : > { %s650_s23 = scalar_lea.vmem %s649_s29, 256  ;;  %p651_p3 = scmp.lt.s32.totalorder %s867_s25, %s649_s29 }
  0x40   : > { %p646_p10 = pnand %p644_p8, %p630_p0  ;;  %p652_p7 = scmp.lt.s32.totalorder %s650_s23, %s643_s27 }
  0x42   : > { %p647_p13 = pneg %p646_p10  ;;  %p653_p9 = por %p652_p7, %p651_p3 }
  0x44   : > { %p654_p2 = pnand %p653_p9, %p647_p13 }
  0x46   : > { %657 = shalt.err (!%p654_p2)
}
  0x47   : > { %536 = dma.hbm_to_vmem [thread:$0]  (!%p863_p11), %s861_s4, 128, %s867_s25, %s149_s5  }
  0x48   : > { %p978_p5 = scmp.ne.s32.totalorder %s973_s20, 0 }
  0x49   : > { %s897_s30 = sand.u32 (!%p978_p5), 1, %s720_s13   ;;  %p979_p0 = scmp.ne.s32.totalorder (!%p978_p5), %s971_s18, 0 }
  0x4a   : > { %168 = sbr.rel (%p978_p5) target bundleno = 483 (0x1e3), region = 32  ;;  %s469_s22 = sshll.u32 (!%p978_p5), %s897_s30, 3 }
  0x4b   : > { %s171_s6 = scalar_lea.sflag (!%p978_p5), [#allocation4], %s897_s30  ;;  %s174_s7 = scalar_lea.vmem (!%p978_p5), [#allocation3], %s469_s22 }
  0x51   : > { %703 = dma.done.wait (%p979_p0), %s171_s6, 128  }
  0x52   : > { %705 = vsyncadd (%p979_p0), %s171_s6, 4294967168  ;;  %p980_p11 = scmp.eq.s32.totalorder %s782_s16, 0 }
  0x54   : > { %707 = dma.done.wait (%p980_p11), [#allocation7], 1024   ;;  %p981_p1 = pmov %p980_p11 }
  0x55   : > { %v734_v0 = vmov 0.0   ;;  %v202_v1 = vld [vmem:[%s174_s7] sm:$0xff]  ;;  %v586_v3 = vld [vmem:[#allocation6] sm:$0xff]   ;;  %v587_v5 = vld [vmem:[#allocation6 + $0x8] sm:$0xff]   ;;  %v735_v16 = vmov -1.0   ;;  %vm214_vm1 = vcmask 257024  }
  0x56   : > { %709 = vsyncadd (%p981_p1), [#allocation7], 4294966272  ;;  %501 = vmatprep.subr.bf16.mxu0 %v734_v0  ;;  %v203_v2 = vand.u32 2147483647, %v202_v1  ;;  %v588_v7 = vld [vmem:[#allocation6 + $0x10] sm:$0xff]   ;;  %v589_v8 = vld [vmem:[#allocation6 + $0x18] sm:$0xff]  }
  0x57   : > { %502 = vmatpush3.bf16.msra.mxu0 %v586_v3  ;;  %v590_v9 = vld [vmem:[#allocation6 + $0x20] sm:$0xff]   ;;  %vm207_vm0 = vcmp.ge.f32.partialorder %v202_v1, 0.0  ;;  %v591_v14 = vld [vmem:[#allocation6 + $0x28] sm:$0xff]   ;;  %v592_v25 = vld [vmem:[#allocation6 + $0x30] sm:$0xff]   ;;  %vm736_vm2 = vmmov 0   ;;  %s737_s18 = smov 32  }
  0x58   : > { %v204_v4 = vsub.f32 0.0, %v203_v2  ;;  %503 = vmatprep.subr.bf16.mxu0 %v734_v0  ;;  %v217_v17 = vsel %vm207_vm0, 1.0, %v735_v16  ;;  %v593_v29 = vld [vmem:[#allocation6 + $0x38] sm:$0xff]   ;;  %517 = vmatprep.mubr.msk.bf16.mxu0 %vm736_vm2, %v734_v0  ;;  %s738_s20 = smov 64   ;;  %s739_s4 = smov 96   ;;  %vm230_vm3 = vcmask 519424  }
  0x59   : > { %vm242_vm4 = vcmask 781824   ;;  %vm253_vm5 = vcmask 1044224   ;;  %v476_v40 = vld [vmem:[%s966_s2] ss:$0 sm:$0xff]  ;;  %s486_s5 = sshll.u32 %s782_s16, 7  ;;  %s200_s8 = scalar_lea.vmem [#allocation8], %s469_s22 }
  0x5a   : > { %v205_v6 = vmul.f32 1.442695, %v204_v4  ;;  %s382_s9 = sshll.u32 %s200_s8, 4  ;;  %s920_s27 = scalar_lea.hbm %s967_s3, %s486_s5  ;;  %s922_s9 = int_to_ptr.vmem [resolvable:$true] %s382_s9 }
  0x5b   : > { %504 = vmatpush3.bf16.msra.mxu0 %v587_v5  ;;  %s369_s16 = scalar_lea.sflag [#allocation5], %s897_s30  ;;  %s658_s28 = scalar_lea.vmem %s922_s9, 128 }
  0x5c   : > { %594 = vpow2.f32 %v205_v6  ;;  %505 = vmatprep.subr.bf16.mxu0 %v734_v0  ;;  %p659_p4 = scmp.ne.s32.totalorder %s922_s9, %s658_s28  ;;  %s740_s29 = smov [#allocation8]  }
  0x5d   : > { %s662_s23 = sshll.u32 %s740_s29, 4  ;;  %s663_s23 = int_to_ptr.vmem [resolvable:$false] %s662_s23 }
  0x5e   : > { %p660_p6 = pnand %p659_p4, %p852_p12  ;;  %s664_s22 = scalar_lea.vmem %s663_s23, 256 }
  0x5f   : > { %506 = vmatpush3.bf16.msra.mxu0 %v588_v7  ;;  %p665_p10 = scmp.lt.s32.totalorder %s922_s9, %s663_s23  ;;  %p666_p13 = scmp.lt.s32.totalorder %s664_s22, %s658_s28 }
  0x60   : > { %507 = vmatprep.subr.bf16.mxu0 %v734_v0  ;;  %p661_p8 = pneg %p660_p6 }
  0x61   : > { %p667_p3 = por %p666_p13, %p665_p10 }
  0x63   : > { %508 = vmatpush3.bf16.msra.mxu0 %v589_v8  ;;  %p668_p7 = pnand %p667_p3, %p661_p8 }
  0x64   : > { %509 = vmatprep.subr.bf16.mxu0 %v734_v0 }
  0x66   : > { %v595_v10 = vpop.eup %594 }
  0x67   : > { %v216_v11 = vmul.f32 %v595_v10, %v595_v10  ;;  %v209_v12 = vadd.f32 1.0, %v595_v10  ;;  %510 = vmatpush3.bf16.msra.mxu0 %v590_v9  ;;  %v208_v18 = vsel %vm207_vm0, 1.0, %v595_v10 }
  0x68   : > { %511 = vmatprep.subr.bf16.mxu0 %v734_v0 }
  0x69   : > { %v220_v13 = vadd.f32 1.0, %v216_v11  ;;  %596 = vrcp.f32 %v209_v12  ;;  %v218_v15 = vsub.f32 1.0, %v216_v11 }
  0x6b   : > { %598 = vrcp.f32 %v220_v13  ;;  %512 = vmatpush3.bf16.msra.mxu0 %v591_v14  ;;  %v219_v19 = vmul.f32 %v218_v15, %v217_v17 }
  0x6c   : > { %513 = vmatprep.subr.bf16.mxu0 %v734_v0 }
  0x6f   : > { %514 = vmatpush3.bf16.msra.mxu0 %v592_v25 }
  0x70   : > { %515 = vmatprep.subr.bf16.mxu0 %v734_v0 }
  0x73   : > { %v597_v20 = vpop.eup %596  ;;  %516 = vmatpush3.bf16.msra.mxu0 %v593_v29 }
  0x74   : > { %v211_v21 = vmul.f32 %v597_v20, %v208_v18 }
  0x75   : > { %v599_v22 = vpop.eup %598 }
  0x76   : > { %v222_v23 = vmul.f32 %v599_v22, %v219_v19  ;;  %v212_v24 = vmul.f32 %v211_v21, %v202_v1 }
  0x78   : > { %v489_v26 = vpack.c.bf16 %v222_v23, %v222_v23  ;;  %v232_v27 = vmul.f32 2.0, %v222_v23  ;;  %v213_v28 = vpack.c.bf16 %v212_v24, %v212_v24 }
  0x7a   : > { %227 = vrot.lane.b32.xlu0 %v489_v26, %s737_s18  ;;  %v233_v30 = vmul.f32 %v232_v27, %v222_v23  ;;  %215 = vst.msk [vmem:[#allocation2] sm:$0xf] %vm214_vm1, %v213_v28 }
  0x7c   : > { %v473_v31 = vadd.f32 -1.0, %v233_v30 }
  0x7e   : > { %v490_v32 = vpack.c.bf16 %v473_v31, %v473_v31  ;;  %v244_v33 = vmul.f32 %v473_v31, %v232_v27 }
  0x80   : > { %239 = vrot.lane.b32.xlu0 %v490_v32, %s738_s20  ;;  %v245_v34 = vsub.f32 %v244_v33, %v222_v23 }
  0x82   : > { %v491_v35 = vpack.c.bf16 %v245_v34, %v245_v34 }
  0x84   : > { %250 = vrot.lane.b32.xlu1 %v491_v35, %s739_s4 }
  0xec   : > { %v228_v36 = vpop.permute.xlu0 %227 }
  0xed   : > { %231 = vst.msk [vmem:[#allocation2] sm:$0xf] %vm230_vm3, %v228_v36 }
  0xf2   : > { %v240_v37 = vpop.permute.xlu0 %239 }
  0xf3   : > { %243 = vst.msk [vmem:[#allocation2] sm:$0xf] %vm242_vm4, %v240_v37 }
  0xf6   : > { %v251_v38 = vpop.permute.xlu1 %250 }
  0xf7   : > { %254 = vst.msk [vmem:[#allocation2] sm:$0xf] %vm253_vm5, %v251_v38 }
  0xfe   : > { %v255_v39 = vld [vmem:[#allocation2] sm:$0xf] }
  0xff   : > { %518 = vmatmul.mubr.bf16.vlgmr.msra.gmra.mrb[0].mxu0 %v255_v39 }
 0x1d2   : > { %v361_v41 = vpop.f32.mrb[0].mxu0 }
 0x1d3   : > { %v362_v42 = vadd.f32 %v476_v40, %v361_v41  ;;  %v519_v43 = vpop.f32.mrb[1].mxu0 }
 0x1d4   : > { %v364_v44 = vpop.f32.mrb[2].mxu0 }
 0x1d5   : > { %367 = vst [vmem:[%s200_s8] sm:$0xff] %v362_v42  ;;  %v520_v45 = vpop.f32.mrb[3].mxu0 }
 0x1d6   : > { %671 = shalt.err (!%p668_p7)
}
 0x1d7   : > { %s672_s30 = scalar_lea.hbm %s920_s27, 128  ;;  %s676_s18 = scalar_lea.hbm %s967_s3, 256 }
 0x1d8   : > { %p673_p9 = scmp.ne.s32.totalorder %s920_s27, %s672_s30  ;;  %p677_p0 = scmp.lt.u32.totalorder %s920_s27, %s967_s3 }
 0x1d9   : > { %p678_p11 = scmp.lt.u32.totalorder %s676_s18, %s672_s30  ;;  %p680_p4 = scmp.lt.u32.totalorder %s672_s30, %s920_s27 }
 0x1da   : > { %p674_p2 = pnand %p673_p9, %p852_p12 }
 0x1db   : > { %p679_p1 = por %p678_p11, %p677_p0 }
 0x1dc   : > { %p675_p5 = pneg %p674_p2 }
 0x1dd   : > { %p681_p6 = por %p680_p4, %p679_p1 }
 0x1df   : > { %p682_p8 = pnand %p681_p6, %p675_p5 }
 0x1e1   : > { %685 = shalt.err (!%p682_p8)
}
 0x1e2   : > { %527 = dma.vmem_to_hbm [thread:$0]  (%p852_p12), %s922_s9, 128, %s920_s27, %s369_s16  }
 0x1e3 PF: > { %s394_s25 = sand.u32 1, %s716_s12   ;;  %p982_p10 = scmp.ne.s32.totalorder %s972_s19, 0 }
 0x1e4   : > { %p983_p13 = scmp.ge.s32.totalorder %s728_s15, 2  ;;  %s395_s26 = scalar_lea.sflag [#allocation5], %s394_s25 }
 0x1e6   : > { %p538_p3 = pnand %p983_p13, %p982_p10 }
 0x1e8   : > { %711 = dma.done.wait (!%p538_p3), %s395_s26, 128  }
 0x1e9   : > { %713 = vsyncadd (!%p538_p3), %s395_s26, 4294967168  ;;  %p17_p7 = scmp.ge.s32.totalorder %s817_s24, 4   ;;  %s984_s12 = smov %s720_s13 }
 0x1ea   : > { %s985_s13 = smov %s724_s14  ;;  %s986_s14 = smov %s848_s17 }
 0x1eb   : > { %s987_s15 = smov %s817_s24  ;;  %19 = sbr.rel (!%p17_p7) target bundleno = 6 (0x6), region = 81 }
 0x1f2   :  { %400 = vsyncpa [#allocation4], 1 }
 0x1f3   :  { %402 = vsyncpa [#allocation4 + $0x1], 1 }
 0x1f4   :  { %403 = vsyncpa [#allocation7], 1 }
 0x1f5   :  { %404 = vsyncpa [#allocation5], 1 }
 0x1f6   :  { %406 = vsyncpa [#allocation5 + $0x1], 1 }

</bundles_post_ra>
